<compile_context>
chip_gen: v6e
topology: v6e:2x2x1
jax: 0.10.0
libtpu: 0.0.40
codegen_flags: <defaults>
</compile_context>

<pallas_src>
import functools

import jax
import jax.numpy as jnp
from jax.experimental import pallas as pl
from jax.experimental.pallas import tpu as pltpu

EPS = 1e-5  # nn.InstanceNorm2d default eps


def _vmem_budget():
    """Per-generation scoped-VMEM limit + tile-selection budget.

    v7x has 64 MiB physical VMEM per TensorCore, v5e/v6e have 128 MiB; v5e's
    default scoped limit is only 16 MiB, so we always set vmem_limit_bytes.
    """
    try:
        cap = int(getattr(pltpu.get_tpu_info(), "vmem_capacity_bytes",
                          64 * 1024 * 1024))
    except Exception:  # info unavailable -> conservative (fits every generation)
        cap = 64 * 1024 * 1024
    vmem_limit = min(cap * 3 // 4, 100 * 1024 * 1024)
    budget = int(vmem_limit * 0.7)
    return vmem_limit, budget


def _choose_row_tile(H, W, Cin, Cout, mm_bytes, ph_bytes, budget_bytes):
    """Largest row tile (divisor of H) whose pipelined per-step VMEM working set
    (double-buffered in/out blocks + f32 matmul accumulator) fits the budget."""
    K, C4 = 4 * Cin, 4 * Cout
    sub = 16 if min(mm_bytes, ph_bytes) < 4 else 8   # sublane tile for packed dtypes
    for tr in sorted((d for d in range(1, H + 1) if H % d == 0), reverse=True):
        tile = tr * W
        if tile % sub != 0 and tile != H * W:
            continue
        p1 = (2 * tile * K * mm_bytes          # double-buffered input block
              + 2 * K * C4 * mm_bytes          # (small) fused weight block
              + 2 * tile * C4 * ph_bytes       # double-buffered phase output
              + 3 * tile * C4 * 4)             # f32 accumulator + temporaries
        p2 = (2 * tile * C4 * ph_bytes         # double-buffered phase input
              + 2 * tile * C4 * 4              # double-buffered f32 output
              + 2 * tile * C4 * 4)             # f32 temporaries
        if max(p1, p2) <= budget_bytes:
            return tr
    return 1


def _conv_phase_kernel(x_ref, w_ref, ph_ref, st_ref):
    """Pass 1: all 4 transposed-conv sub-pixel phases with a single K=4*Cin matmul,
    plus per-tile per-(phase,channel) partial statistics for InstanceNorm."""
    # x_ref : (1, TILE, 4*Cin)   pre-shifted input pixels, mm_dtype
    # w_ref : (4*Cin, 4*Cout)    fused phase-major weight matrix, mm_dtype
    # ph_ref: (1, TILE, 4*Cout)  un-normalized phases, phase_dtype
    # st_ref: (1, 1, 2, 4*Cout)  per-tile [column sum ; column sum-of-squares] (f32)
    y = jax.lax.dot_general(
        x_ref[0], w_ref[...],
        dimension_numbers=(((1,), (0,)), ((), ())),
        preferred_element_type=jnp.float32)              # (TILE, 4*Cout) f32
    ph_ref[0] = y.astype(ph_ref.dtype)
    # Stats from the f32 accumulator (before any bf16 rounding of the phase buffer).
    col_sum = jnp.sum(y, axis=0, keepdims=True)          # (1, 4*Cout)
    col_ssq = jnp.sum(y * y, axis=0, keepdims=True)      # (1, 4*Cout)
    st_ref[0, 0] = jnp.concatenate([col_sum, col_ssq], axis=0)


def _norm_relu_kernel(ph_ref, np_ref, o_ref):
    """Pass 2: InstanceNorm (affine=False) + ReLU, lane-dense memory-bound pass."""
    y = ph_ref[0].astype(jnp.float32)   # (TILE, 4*Cout)
    p = np_ref[0]                       # (2, 4*Cout): [mean ; inv_std] phase-tiled
    m = p[0:1, :]
    s = p[1:2, :]
    o_ref[0] = jnp.maximum((y - m) * s, 0.0).astype(o_ref.dtype)


def upsampling_block_forward(x_nchw, weight, bias=None, *, row_tile=None,
                             mm_dtype=None, phase_dtype=None):
    """UpsamplingBlock.forward for mode='upconv', post_interp_convtrans=False.

    x_nchw: (N, Cin, H, W) float32
    weight: (Cin, Cout, 3, 3) float32 (PyTorch ConvTranspose2d layout)
    bias:   (Cout,) — accepted for API parity but unused (cancelled by InstanceNorm)
    mm_dtype:    matmul input dtype; defaults to bf16 when K=4*Cin >= 128, else f32.
    phase_dtype: dtype of the intermediate phase buffer; defaults to mm_dtype.
    returns (N, Cout, 2H, 2W) float32
    """
    # TODO(synk): interpolator / post_interp_convtrans branch is not taken with the
    # module defaults (mode='upconv', post_interp_convtrans=False); not implemented.
    del bias  # exactly cancelled by InstanceNorm2d(affine=False) mean subtraction
    # (must be reinstated if affine=True / post_interp paths are ever enabled)

    N, Cin, H, W = x_nchw.shape
    Cout = weight.shape[1]
    K = 4 * Cin
    C4 = 4 * Cout
    HW = H * W

    if mm_dtype is None:
        mm_dtype = jnp.bfloat16 if K >= 128 else jnp.float32
    mm_dtype = jnp.dtype(mm_dtype)
    phase_dtype = jnp.dtype(mm_dtype if phase_dtype is None else phase_dtype)

    vmem_limit, budget = _vmem_budget()
    if row_tile is None:
        row_tile = _choose_row_tile(H, W, Cin, Cout, mm_dtype.itemsize,
                                    phase_dtype.itemsize, budget)
    assert H % row_tile == 0, (H, row_tile)
    R = H // row_tile
    TILE = row_tile * W

    # ---------------- wrapper-side prep (pure layout; one fused XLA copy) --------
    # Pre-shifted channel-concatenated input: [x(i,j) | x(i,j+1) | x(i+1,j) | x(i+1,j+1)]
    # zero-padded past the bottom/right edge; pre-cast to mm_dtype.
    x_nhwc = jnp.transpose(x_nchw, (0, 2, 3, 1))                     # (N, H, W, Cin)
    xp = jnp.pad(x_nhwc, ((0, 0), (0, 1), (0, 1), (0, 0)))           # (N, H+1, W+1, Cin)
    x_shift = jnp.concatenate(
        [xp[:, :H, :W, :],        # x[i,   j  ]
         xp[:, :H, 1:, :],        # x[i,   j+1]
         xp[:, 1:, :W, :],        # x[i+1, j  ]
         xp[:, 1:, 1:, :]],       # x[i+1, j+1]
        axis=-1).reshape(N, HW, K).astype(mm_dtype)

    # Fused (4*Cin, 4*Cout) weight: row blocks per shifted input, column blocks per
    # output phase [ee | eo | oe | oo].  PyTorch layout (Cin, Cout, ky, kx):
    #   ee = x.w11 ; eo = x.w12 + x_j.w10 ; oe = x.w21 + x_i.w01
    #   oo = x.w22 + x_j.w20 + x_i.w02 + x_ij.w00
    wt = jnp.transpose(weight, (2, 3, 0, 1)).astype(jnp.float32)     # (ky, kx, Cin, Cout)
    z = jnp.zeros((Cin, Cout), jnp.float32)
    w_fused = jnp.concatenate([
        jnp.concatenate([wt[1, 1], wt[1, 2], wt[2, 1], wt[2, 2]], axis=1),  # x
        jnp.concatenate([z,        wt[1, 0], z,        wt[2, 0]], axis=1),  # x[i, j+1]
        jnp.concatenate([z,        z,        wt[0, 1], wt[0, 2]], axis=1),  # x[i+1, j]
        jnp.concatenate([z,        z,        z,        wt[0, 0]], axis=1),  # x[i+1, j+1]
    ], axis=0).astype(mm_dtype)                                       # (4*Cin, 4*Cout)

    cparams = pltpu.CompilerParams(
        dimension_semantics=("parallel", "parallel"),
        vmem_limit_bytes=vmem_limit)

    # ---------------- pass 1: conv phases + partial stats ------------------------
    phases, stats = pl.pallas_call(
        _conv_phase_kernel,
        out_shape=(jax.ShapeDtypeStruct((N, HW, C4), phase_dtype),
                   jax.ShapeDtypeStruct((N, R, 2, C4), jnp.float32)),
        grid_spec=pltpu.PrefetchScalarGridSpec(
            num_scalar_prefetch=0,
            grid=(N, R),
            in_specs=[
                pl.BlockSpec((1, TILE, K), lambda n, r: (n, r, 0)),
                pl.BlockSpec((K, C4), lambda n, r: (0, 0)),
            ],
            out_specs=[
                pl.BlockSpec((1, TILE, C4), lambda n, r: (n, r, 0)),
                pl.BlockSpec((1, 1, 2, C4), lambda n, r: (n, r, 0, 0)),
            ],
        ),
        compiler_params=cparams,
    )(x_shift, w_fused)

    # Tiny per-image stat reduction (across row tiles and the 4 phases) in plain JAX.
    s_all = stats.sum(axis=1)                                   # (N, 2, 4*Cout)
    col_sum = s_all[:, 0].reshape(N, 4, Cout).sum(axis=1)       # (N, Cout)
    col_ssq = s_all[:, 1].reshape(N, 4, Cout).sum(axis=1)
    inv_n = 1.0 / (4.0 * HW)
    mean = col_sum * inv_n
    # Single-pass variance (E[y^2]-mean^2) in f32; clamp guards cancellation.
    # TODO(synk): use a shifted / two-pass variance if accuracy regresses at scale.
    var = jnp.maximum(col_ssq * inv_n - mean * mean, 0.0)
    inv_std = jax.lax.rsqrt(var + EPS)
    norm_params = jnp.stack([jnp.tile(mean, (1, 4)),
                             jnp.tile(inv_std, (1, 4))], axis=1)  # (N, 2, 4*Cout)

    # ---------------- pass 2: InstanceNorm + ReLU (mem-bound, lane-dense) --------
    alias = {0: 0} if phase_dtype == jnp.float32 else {}   # in-place only if dtypes match
    normalized = pl.pallas_call(
        _norm_relu_kernel,
        out_shape=jax.ShapeDtypeStruct((N, HW, C4), jnp.float32),
        grid_spec=pltpu.PrefetchScalarGridSpec(
            num_scalar_prefetch=0,
            grid=(N, R),
            in_specs=[
                pl.BlockSpec((1, TILE, C4), lambda n, r: (n, r, 0)),
                pl.BlockSpec((1, 2, C4), lambda n, r: (n, 0, 0)),
            ],
            out_specs=pl.BlockSpec((1, TILE, C4), lambda n, r: (n, r, 0)),
        ),
        compiler_params=cparams,
        input_output_aliases=alias,
    )(phases, norm_params)

    # Sub-pixel interleave + NHWC->NCHW as ONE XLA 6-D transpose (single HBM round
    # trip); both trailing reshapes are bitcasts.
    # TODO(synk): for NHWC consumers, fold the interleave into pass 2 and drop this.
    y6 = normalized.reshape(N, H, W, 2, 2, Cout)                     # (n,h,w,pi,pj,c)
    out = jnp.transpose(y6, (0, 5, 1, 3, 2, 4)).reshape(N, Cout, 2 * H, 2 * W)
    return out


def reference_forward(x_nchw, weight, bias):
    """Pure-JAX reference: ConvTranspose2d(3, s=2, p=1, op=1) + InstanceNorm + ReLU."""
    k = jnp.transpose(jnp.flip(weight, axis=(2, 3)), (1, 0, 2, 3))  # (Cout, Cin, 3, 3)
    y = jax.lax.conv_general_dilated(
        x_nchw, k, window_strides=(1, 1), padding=((1, 2), (1, 2)),
        lhs_dilation=(2, 2), dimension_numbers=("NCHW", "OIHW", "NCHW"))
    y = y + bias[None, :, None, None]
    mean = y.mean(axis=(2, 3), keepdims=True)
    var = ((y - mean) ** 2).mean(axis=(2, 3), keepdims=True)
    y = (y - mean) / jnp.sqrt(var + EPS)
    return jnp.maximum(y, 0.0)


if __name__ == "__main__":
    key = jax.random.PRNGKey(0)
    kx, kw, kb = jax.random.split(key, 3)
    N, Cin, H, W = 2, 4, 16, 16
    Cout = 8

    x = jax.random.normal(kx, (N, Cin, H, W), dtype=jnp.float32)
    # Deterministic synthetic params (ConvTranspose2d weight: (Cin, Cout, kH, kW)).
    weight = 0.2 * jax.random.normal(kw, (Cin, Cout, 3, 3), dtype=jnp.float32)
    bias = 0.1 * jax.random.normal(kb, (Cout,), dtype=jnp.float32)

    ref = reference_forward(x, weight, bias)

    # f32 matmul / f32 phase buffer path: tight tolerance.
    fwd_f32 = jax.jit(functools.partial(upsampling_block_forward, row_tile=8,
                                        mm_dtype=jnp.float32))
    out = jax.block_until_ready(fwd_f32(x, weight, bias))
    assert out.shape == (N, Cout, 2 * H, 2 * W), out.shape
    max_err = float(jnp.max(jnp.abs(out - ref)))
    assert bool(jnp.allclose(out, ref, atol=2e-3, rtol=2e-3)), max_err

    # bf16 matmul + bf16 phase buffer path (the high-throughput configuration at
    # real channel counts): looser tolerance reflecting bf16 rounding.
    fwd_bf16 = jax.jit(functools.partial(upsampling_block_forward,
                                         mm_dtype=jnp.bfloat16))
    out_bf = jax.block_until_ready(fwd_bf16(x, weight, bias))
    max_err_bf = float(jnp.max(jnp.abs(out_bf - ref)))
    assert bool(jnp.allclose(out_bf, ref, atol=8e-2, rtol=8e-2)), max_err_bf

    print("KERNEL_OK")
</pallas_src>

<mosaic_0001>
module attributes {stable_mosaic.version = 11 : i64} {
  func.func @_conv_phase_kernel(%arg0: i32, %arg1: i32, %arg2: memref<1x128x16xf32, #tpu.memory_space<vmem>>, %arg3: memref<16x32xf32, #tpu.memory_space<vmem>>, %arg4: memref<1x128x32xf32, #tpu.memory_space<vmem>>, %arg5: memref<1x1x2x32xf32, #tpu.memory_space<vmem>>) attributes {dimension_semantics = [#tpu.dimension_semantics<parallel>, #tpu.dimension_semantics<parallel>], iteration_bounds = array<i64: 2, 2>, scalar_prefetch = 0 : i64, scratch_operands = 0 : i64, tpu.core_type = #tpu.core_type<tc>, window_params = [{transform_indices = @transform_0, window_bounds = array<i64: 1, 128, 16>}, {pipeline_mode = #tpu.pipeline_mode<synchronous>, transform_indices = @transform_1, window_bounds = array<i64: 16, 32>}, {transform_indices = @transform_2, window_bounds = array<i64: 1, 128, 32>}, {transform_indices = @transform_3, window_bounds = array<i64: 1, 1, 2, 32>}]} {
    %c0 = arith.constant 0 : index
    %c0_0 = arith.constant 0 : index
    %c0_1 = arith.constant 0 : index
    %0 = vector.load %arg2[%c0, %c0_0, %c0_1] : memref<1x128x16xf32, #tpu.memory_space<vmem>>, vector<1x128x16xf32>
    %1 = vector.shape_cast %0 : vector<1x128x16xf32> to vector<128x16xf32>
    %c0_2 = arith.constant 0 : index
    %c0_3 = arith.constant 0 : index
    %2 = vector.load %arg3[%c0_2, %c0_3] : memref<16x32xf32, #tpu.memory_space<vmem>>, vector<16x32xf32>
    %cst = arith.constant dense<0.000000e+00> : vector<128x32xf32>
    %3 = tpu.matmul %1, %2, %cst {dimension_numbers = #tpu.dot_dimension_numbers<[1], [0], [0], [1], [0, 0, 1, 1], [], []>} : vector<128x16xf32>, vector<16x32xf32>, vector<128x32xf32> -> vector<128x32xf32>
    %c0_4 = arith.constant 0 : index
    %c0_5 = arith.constant 0 : index
    %c0_6 = arith.constant 0 : index
    %4 = vector.load %arg4[%c0_4, %c0_5, %c0_6] : memref<1x128x32xf32, #tpu.memory_space<vmem>>, vector<1x128x32xf32>
    %5 = vector.shape_cast %4 : vector<1x128x32xf32> to vector<128x32xf32>
    %6 = vector.shape_cast %3 : vector<128x32xf32> to vector<1x128x32xf32>
    tpu.vector_store %arg4[%c0_4, %c0_5, %c0_6], %6 {strides = array<i32>} : memref<1x128x32xf32, #tpu.memory_space<vmem>>, vector<1x128x32xf32>,
    %cst_7 = arith.constant dense<0.000000e+00> : vector<32xf32>
    %7 = vector.multi_reduction <add>, %3, %cst_7 [0] : vector<128x32xf32> to vector<32xf32>
    %8 = vector.shape_cast %7 : vector<32xf32> to vector<1x32xf32>
    %9 = arith.mulf %3, %3 : vector<128x32xf32>
    %cst_8 = arith.constant dense<0.000000e+00> : vector<32xf32>
    %10 = vector.multi_reduction <add>, %9, %cst_8 [0] : vector<128x32xf32> to vector<32xf32>
    %11 = vector.shape_cast %10 : vector<32xf32> to vector<1x32xf32>
    %12 = tpu.concatenate %8, %11 in 0 : vector<1x32xf32>, vector<1x32xf32> -> vector<2x32xf32>
    %c0_9 = arith.constant 0 : index
    %c0_10 = arith.constant 0 : index
    %c0_11 = arith.constant 0 : index
    %c0_12 = arith.constant 0 : index
    %13 = vector.load %arg5[%c0_9, %c0_10, %c0_11, %c0_12] : memref<1x1x2x32xf32, #tpu.memory_space<vmem>>, vector<1x1x2x32xf32>
    %14 = vector.shape_cast %13 : vector<1x1x2x32xf32> to vector<2x32xf32>
    %15 = vector.shape_cast %12 : vector<2x32xf32> to vector<1x1x2x32xf32>
    tpu.vector_store %arg5[%c0_9, %c0_10, %c0_11, %c0_12], %15 {strides = array<i32>} : memref<1x1x2x32xf32, #tpu.memory_space<vmem>>, vector<1x1x2x32xf32>,
    return
  }
  func.func @transform_0(%arg0: i32, %arg1: i32) -> (i32, i32, i32) {
    %c0_i32 = arith.constant 0 : i32
    %c0_i32_0 = arith.constant 0 : i32
    return %arg0, %arg1, %c0_i32 : i32, i32, i32
  }
  func.func @transform_1(%arg0: i32, %arg1: i32) -> (i32, i32) {
    %c0_i32 = arith.constant 0 : i32
    %c0_i32_0 = arith.constant 0 : i32
    %c0_i32_1 = arith.constant 0 : i32
    return %c0_i32, %c0_i32_0 : i32, i32
  }
  func.func @transform_2(%arg0: i32, %arg1: i32) -> (i32, i32, i32) {
    %c0_i32 = arith.constant 0 : i32
    %c0_i32_0 = arith.constant 0 : i32
    return %arg0, %arg1, %c0_i32 : i32, i32, i32
  }
  func.func @transform_3(%arg0: i32, %arg1: i32) -> (i32, i32, i32, i32) {
    %c0_i32 = arith.constant 0 : i32
    %c0_i32_0 = arith.constant 0 : i32
    %c0_i32_1 = arith.constant 0 : i32
    return %arg0, %arg1, %c0_i32, %c0_i32_0 : i32, i32, i32, i32
  }
}

module attributes {stable_mosaic.version = 11 : i64} {
  func.func @_norm_relu_kernel(%arg0: i32, %arg1: i32, %arg2: memref<1x128x32xf32, #tpu.memory_space<vmem>>, %arg3: memref<1x2x32xf32, #tpu.memory_space<vmem>>, %arg4: memref<1x128x32xf32, #tpu.memory_space<vmem>>) attributes {dimension_semantics = [#tpu.dimension_semantics<parallel>, #tpu.dimension_semantics<parallel>], iteration_bounds = array<i64: 2, 2>, scalar_prefetch = 0 : i64, scratch_operands = 0 : i64, tpu.core_type = #tpu.core_type<tc>, window_params = [{transform_indices = @transform_0, window_bounds = array<i64: 1, 128, 32>}, {transform_indices = @transform_1, window_bounds = array<i64: 1, 2, 32>}, {transform_indices = @transform_2, window_bounds = array<i64: 1, 128, 32>}]} {
    %c0 = arith.constant 0 : index
    %c0_0 = arith.constant 0 : index
    %c0_1 = arith.constant 0 : index
    %0 = vector.load %arg2[%c0, %c0_0, %c0_1] : memref<1x128x32xf32, #tpu.memory_space<vmem>>, vector<1x128x32xf32>
    %1 = vector.shape_cast %0 : vector<1x128x32xf32> to vector<128x32xf32>
    %c0_2 = arith.constant 0 : index
    %c0_3 = arith.constant 0 : index
    %c0_4 = arith.constant 0 : index
    %2 = vector.load %arg3[%c0_2, %c0_3, %c0_4] : memref<1x2x32xf32, #tpu.memory_space<vmem>>, vector<1x2x32xf32>
    %3 = vector.shape_cast %2 : vector<1x2x32xf32> to vector<2x32xf32>
    %4 = vector.extract_strided_slice %3 {offsets = [0, 0], sizes = [1, 32], strides = [1, 1]} : vector<2x32xf32> to vector<1x32xf32>
    %5 = vector.extract_strided_slice %3 {offsets = [1, 0], sizes = [1, 32], strides = [1, 1]} : vector<2x32xf32> to vector<1x32xf32>
    %6 = vector.broadcast %4 : vector<1x32xf32> to vector<128x32xf32>
    %7 = arith.subf %1, %6 : vector<128x32xf32>
    %8 = vector.broadcast %5 : vector<1x32xf32> to vector<128x32xf32>
    %9 = arith.mulf %7, %8 : vector<128x32xf32>
    %cst = arith.constant 0.000000e+00 : f32
    %10 = vector.broadcast %cst : f32 to vector<128x32xf32>
    %11 = arith.maximumf %9, %10 : vector<128x32xf32>
    %c0_5 = arith.constant 0 : index
    %c0_6 = arith.constant 0 : index
    %c0_7 = arith.constant 0 : index
    %12 = vector.load %arg4[%c0_5, %c0_6, %c0_7] : memref<1x128x32xf32, #tpu.memory_space<vmem>>, vector<1x128x32xf32>
    %13 = vector.shape_cast %12 : vector<1x128x32xf32> to vector<128x32xf32>
    %14 = vector.shape_cast %11 : vector<128x32xf32> to vector<1x128x32xf32>
    tpu.vector_store %arg4[%c0_5, %c0_6, %c0_7], %14 {strides = array<i32>} : memref<1x128x32xf32, #tpu.memory_space<vmem>>, vector<1x128x32xf32>,
    return
  }
  func.func @transform_0(%arg0: i32, %arg1: i32) -> (i32, i32, i32) {
    %c0_i32 = arith.constant 0 : i32
    %c0_i32_0 = arith.constant 0 : i32
    return %arg0, %arg1, %c0_i32 : i32, i32, i32
  }
  func.func @transform_1(%arg0: i32, %arg1: i32) -> (i32, i32, i32) {
    %c0_i32 = arith.constant 0 : i32
    %c0_i32_0 = arith.constant 0 : i32
    %c0_i32_1 = arith.constant 0 : i32
    return %arg0, %c0_i32, %c0_i32_0 : i32, i32, i32
  }
  func.func @transform_2(%arg0: i32, %arg1: i32) -> (i32, i32, i32) {
    %c0_i32 = arith.constant 0 : i32
    %c0_i32_0 = arith.constant 0 : i32
    return %arg0, %arg1, %c0_i32 : i32, i32, i32
  }
}

</mosaic_0001>

<bundles_post_ra>
// kernel: squeeze.20
= control target key start
LH: loop header
LB: loop body
LE: loop exit
PB: predicated region body
PF: predicated region fallthrough
CT: control target
= control target key end

     0   :  { %s47_s8 = smov 104   ;;  %vm8_vm0 = vcmask 64512   ;;  %s48_s9 = smov 112   ;;  %s68_s0 = inlined_call_operand.vmem [shape: f32[2,32], index: 0, kind: input, shape index: {}]   ;;  %s69_s1 = inlined_call_operand.vmem [shape: f32[2,4,8], index: 1, kind: output, shape index: {}]  }
   0x1   :  { %v5_v0 = vld [vmem:[%s68_s0] sm:$0x3]  ;;  %s46_s0 = smov 120  }
   0x2   :  { %6 = vst [vmem:[#allocation1] sm:$0x3] %v5_v0 }
   0x9   :  { %v10_v1 = vld [vmem:[#allocation1] sm:$0x3]  }
   0xa   :  { %v22_v2 = vld [vmem:[#allocation1] sm:$0x3]   ;;  %11 = vrot.lane.b32.xlu0 %v10_v1, %s46_s0 }
   0xb   :  { %23 = vrot.lane.b32.xlu1 %v22_v2, %s47_s8  ;;  %v7_v3 = vld [vmem:[#allocation1] sm:$0x3]  }
   0xc   :  { %v16_v4 = vld [vmem:[#allocation1] sm:$0x3]   ;;  %9 = vst.msk [vmem:[#allocation0] ss:$8 sm:$0x3] %vm8_vm0, %v7_v3  }
   0xe   :  { %17 = vrot.lane.b32.xlu0 %v16_v4, %s48_s9 }
  0x7c   :  { %v12_v5 = vpop.permute.xlu0 %11  }
  0x7d   :  { %v24_v6 = vpop.permute.xlu1 %23   ;;  %15 = vst.msk [vmem:[#allocation0 + $0x1] ss:$8 sm:$0x3] %vm8_vm0, %v12_v5  }
  0x7e   :  { %27 = vst.msk [vmem:[#allocation0 + $0x3] ss:$8 sm:$0x3] %vm8_vm0, %v24_v6  }
  0x80   :  { %v18_v7 = vpop.permute.xlu0 %17  }
  0x81   :  { %21 = vst.msk [vmem:[#allocation0 + $0x2] ss:$8 sm:$0x3] %vm8_vm0, %v18_v7  }
  0x88   :  { %v32_v8 = vld [vmem:[#allocation0] sm:$0xf]  ;;  %v37_v9 = vld [vmem:[#allocation0 + $0x8] sm:$0xf] }
  0x89   :  { %35 = vst [vmem:[%s69_s1] sm:$0xf] %v32_v8  ;;  %42 = vst [vmem:[%s69_s1 + $0x4] sm:$0xf] %v37_v9 }

// kernel: upsampling_block_forward.2
= control target key start
LH: loop header
LB: loop body
LE: loop exit
PB: predicated region body
PF: predicated region fallthrough
CT: control target
= control target key end

     0   :  { %s872_s12 = smov 0   ;;  %s874_s13 = smov 0   ;;  %s1042_s0 = inlined_call_operand.vmem [shape: f32[2,256,16], index: 0, kind: input, shape index: {}]   ;;  %s1043_s1 = inlined_call_operand.vmem [shape: f32[16,32], index: 1, kind: input, shape index: {}]   ;;  %s1044_s2 = inlined_call_operand.vmem [shape: f32[2,256,32], index: 2, kind: output, shape index: {0}]   ;;  %s1045_s3 = inlined_call_operand.vmem [shape: f32[2,2,2,32], index: 3, kind: output, shape index: {1}]  }
   0x1   :  { %s876_s14 = smov 0   ;;  %s878_s15 = smov 0  }
   0x2   :  { %s880_s16 = smov 0  }
   0x3 LB: > { %s23_s17 = sadd.s32 1, %s842_s14  ;;  %s26_s18 = sadd.s32 1, %s846_s15  ;;  %s850_s16 = sphi %s880_s16, %s14_s16   ;;  %s846_s15 = sphi %s878_s15, %s1049_s15   ;;  %s842_s14 = sphi %s876_s14, %s1048_s14   ;;  %s838_s13 = sphi %s874_s13, %s1047_s13   ;;  %s834_s12 = sphi %s872_s12, %s1046_s12  }
   0x4   : > { %p24_p0 = scmp.ge.s32.totalorder %s23_s17, 2  ;;  %p695_p1 = scmp.ge.s32.totalorder %s850_s16, 1 }
   0x5   : > { %p163_p2 = scmp.lt.s32.totalorder %s850_s16, 5 }
   0x6   : > { %s1051_s17 = smov (%p24_p0, %s23_s17), 0  ;;  %s1053_s18 = smov (!%p24_p0, %s26_s18), %s846_s15 }
   0x7   : > { %p164_p3 = pnand %p695_p1, %p163_p2  ;;  %p28_p4 = scmp.ge.s32.totalorder %s1053_s18, 2 }
   0x8   : > { %s696_s23 = sshll.u32 (!%p164_p3), %s834_s12, 4  ;;  %p204_p5 = scmp.lt.s32.totalorder (!%p164_p3), %s838_s13, 1 }
   0x9   : > { %s1055_s18 = smov (%p28_p4, %s1053_s18), 0  ;;  %167 = sbr.rel (%p164_p3) target bundleno = 265 (0x109), region = 28 }
   0xa   : > { %p206_p6 = scmp.lt.s32.totalorder (!%p164_p3), %s696_s23, 31  ;;  %p225_p7 = scmp.lt.s32.totalorder (!%p164_p3), %s834_s12, 1 }
   0xe   : > { %v248_v0 = vld [vmem:[%s1043_s1 + $0x8] sm:$0xff]  ;;  %v247_v1 = vld [vmem:[%s1043_s1] sm:$0xff]  ;;  %s1057_s13 = smov (!%p204_p5, %s838_s13), 1  ;;  %s1059_s23 = smov (!%p206_p6, %s696_s23), 31  ;;  %vm249_vm0 = vcmask 130048   ;;  %vm443_vm1 = vcmask 261120  }
   0xf   : > { %740 = vmatprep.subr.mxu0 %v248_v0  ;;  %768 = vmatprep.subr.mxu1 %v248_v0  ;;  %s697_s24 = sshll.u32 %s1057_s13, 5  ;;  %s1061_s12 = smov (!%p225_p7, %s834_s12), 1  ;;  %vm550_vm2 = vcmask 1040384   ;;  %vm552_vm3 = vcmask 254976  }
  0x10   : > { %741 = vmatpush3.msra.mxu0 %v248_v0  ;;  %770 = vmatpush3.msra.mxu1 %v248_v0  ;;  %s914_s25 = sadd.s32 %s697_s24, %s1059_s23  ;;  %s702_s6 = sshll.u32 %s1057_s13, 1 }
  0x11   : > { %742 = vmatprep.subr.mxu0 %v247_v1  ;;  %769 = vmatprep.subr.mxu1 %v247_v1  ;;  %s698_s26 = sshll.u32 %s914_s25, 3  ;;  %s228_s7 = sadd.s32 %s702_s6, %s1061_s12 }
  0x12   : > { %743 = vmatpush3.msra.mxu0 %v247_v1  ;;  %771 = vmatpush3.msra.mxu1 %v247_v1  ;;  %s211_s29 = scalar_lea.vmem %s1042_s0, %s698_s26  ;;  %s943_s5 = scalar_lea.vmem %s1044_s2, %s698_s26 }
  0x13   : > { %v231_v2 = vld [vmem:[%s211_s29] sm:$0xff]  ;;  %v232_v3 = vld [vmem:[%s211_s29 + $0x8] sm:$0xff]  ;;  %v233_v4 = vld [vmem:[%s211_s29 + $0x10] sm:$0xff]  ;;  %s703_s8 = sshll.u32 %s228_s7, 1 }
  0x14   : > { %744 = vmatprep.mubr.msk.f32.mxu0 %vm249_vm0, %v231_v2  ;;  %v239_v5 = vld [vmem:[%s211_s29 + $0x40] sm:$0xff]  ;;  %v234_v6 = vld [vmem:[%s211_s29 + $0x18] sm:$0xff]  ;;  %v240_v7 = vld [vmem:[%s211_s29 + $0x48] sm:$0xff]  ;;  %s230_s11 = scalar_lea.vmem %s1045_s3, %s703_s8 }
  0x15   : > { %745 = vmatmul.mubr.msk.f32.vlgmr.msra.gmra.mxu0 %vm249_vm0, %v232_v3  ;;  %756 = vmatprep.mubr.msk.f32.mxu1 %vm249_vm0, %v239_v5  ;;  %v241_v8 = vld [vmem:[%s211_s29 + $0x50] sm:$0xff]  ;;  %v235_v9 = vld [vmem:[%s211_s29 + $0x20] sm:$0xff]  ;;  %v242_v10 = vld [vmem:[%s211_s29 + $0x58] sm:$0xff] }
  0x16   : > { %747 = vmatprep.mubr.msk.f32.mxu0 %vm249_vm0, %v233_v4  ;;  %757 = vmatmul.mubr.msk.f32.vlgmr.msra.gmra.mxu1 %vm249_vm0, %v240_v7  ;;  %v243_v11 = vld [vmem:[%s211_s29 + $0x60] sm:$0xff]  ;;  %v236_v12 = vld [vmem:[%s211_s29 + $0x28] sm:$0xff]  ;;  %v237_v13 = vld [vmem:[%s211_s29 + $0x30] sm:$0xff] }
  0x17   : > { %759 = vmatprep.mubr.msk.f32.mxu1 %vm249_vm0, %v241_v8  ;;  %v244_v14 = vld [vmem:[%s211_s29 + $0x68] sm:$0xff]  ;;  %v245_v15 = vld [vmem:[%s211_s29 + $0x70] sm:$0xff]  ;;  %v238_v16 = vld [vmem:[%s211_s29 + $0x38] sm:$0xff] }
  0x18   : > { %v246_v17 = vld [vmem:[%s211_s29 + $0x78] sm:$0xff] }
  0x19   : > { %748 = vmatmul.mubr.msk.f32.gmra.mxu0 %vm249_vm0, %v234_v6 }
  0x1a   : > { %750 = vmatprep.mubr.msk.f32.mxu0 %vm249_vm0, %v235_v9  ;;  %760 = vmatmul.mubr.msk.f32.gmra.mxu1 %vm249_vm0, %v242_v10 }
  0x1b   : > { %762 = vmatprep.mubr.msk.f32.mxu1 %vm249_vm0, %v243_v11 }
  0x1d   : > { %751 = vmatmul.mubr.msk.f32.gmra.mxu0 %vm249_vm0, %v236_v12 }
  0x1e   : > { %753 = vmatprep.mubr.msk.f32.mxu0 %vm249_vm0, %v237_v13  ;;  %763 = vmatmul.mubr.msk.f32.gmra.mxu1 %vm249_vm0, %v244_v14 }
  0x1f   : > { %765 = vmatprep.mubr.msk.f32.mxu1 %vm249_vm0, %v245_v15 }
  0x21   : > { %754 = vmatmul.mubr.msk.f32.gmra.mxu0 %vm249_vm0, %v238_v16 }
  0x22   : > { %766 = vmatmul.mubr.msk.f32.gmra.mxu1 %vm249_vm0, %v246_v17 }
  0xd5   : > { %v746_v18 = vpop.f32.mrf.mxu0 }
  0xd6   : > { %445 = vst.msk [vmem:[%s943_s5 + $0x8] sm:$0xff] %vm443_vm1, %v746_v18  ;;  %v947_v20 = vpop.f32.mrf.mxu1  ;;  %v498_v21 = vmul.f32 %v746_v18, %v746_v18  ;;  %v461_v26 = vsel %vm443_vm1, %v746_v18, 0.0 }
  0xd7   : > { %v364_v19 = vpop.f32.mrf.mxu0  ;;  %453 = vst.msk [vmem:[%s943_s5 + $0x48] sm:$0xff] %vm443_vm1, %v947_v20  ;;  %v506_v8 = vmul.f32 %v947_v20, %v947_v20  ;;  %v477_v12 = vsel %vm443_vm1, %v947_v20, 0.0 }
  0xd8   : > { %444 = vst.msk [vmem:[%s943_s5] sm:$0xff] %vm443_vm1, %v364_v19  ;;  %v460_v22 = vsel %vm443_vm1, %v364_v19, 0.0  ;;  %v497_v23 = vmul.f32 %v364_v19, %v364_v19  ;;  %v404_v25 = vpop.f32.mrf.mxu1  ;;  %v514_v31 = vsel %vm443_vm1, %v498_v21, 0.0 }
  0xd9   : > { %v749_v24 = vpop.f32.mrf.mxu0  ;;  %452 = vst.msk [vmem:[%s943_s5 + $0x40] sm:$0xff] %vm443_vm1, %v404_v25  ;;  %v462_v28 = vadd.f32 %v461_v26, %v460_v22  ;;  %v505_v4 = vmul.f32 %v404_v25, %v404_v25  ;;  %v475_v9 = vsel %vm443_vm1, %v404_v25, 0.0  ;;  %v530_v17 = vsel %vm443_vm1, %v506_v8, 0.0 }
  0xda   : > { %v513_v27 = vsel %vm443_vm1, %v497_v23, 0.0  ;;  %447 = vst.msk [vmem:[%s943_s5 + $0x18] sm:$0xff] %vm443_vm1, %v749_v24  ;;  %v961_v30 = vpop.f32.mrf.mxu1  ;;  %v500_v32 = vmul.f32 %v749_v24, %v749_v24  ;;  %v465_v39 = vsel %vm443_vm1, %v749_v24, 0.0 }
  0xdb   : > { %v374_v29 = vpop.f32.mrf.mxu0  ;;  %455 = vst.msk [vmem:[%s943_s5 + $0x58] sm:$0xff] %vm443_vm1, %v961_v30  ;;  %v515_v35 = vadd.f32 %v514_v31, %v513_v27  ;;  %v528_v13 = vsel %vm443_vm1, %v505_v4, 0.0  ;;  %v508_v18 = vmul.f32 %v961_v30, %v961_v30  ;;  %v481_v23 = vsel %vm443_vm1, %v961_v30, 0.0 }
  0xdc   : > { %446 = vst.msk [vmem:[%s943_s5 + $0x10] sm:$0xff] %vm443_vm1, %v374_v29  ;;  %v463_v33 = vsel %vm443_vm1, %v374_v29, 0.0  ;;  %v499_v34 = vmul.f32 %v374_v29, %v374_v29  ;;  %v414_v38 = vpop.f32.mrf.mxu1  ;;  %v518_v45 = vsel %vm443_vm1, %v500_v32, 0.0 }
  0xdd   : > { %v464_v36 = vadd.f32 %v463_v33, %v462_v28  ;;  %v752_v37 = vpop.f32.mrf.mxu0  ;;  %454 = vst.msk [vmem:[%s943_s5 + $0x50] sm:$0xff] %vm443_vm1, %v414_v38  ;;  %v507_v14 = vmul.f32 %v414_v38, %v414_v38  ;;  %v479_v19 = vsel %vm443_vm1, %v414_v38, 0.0  ;;  %v534_v27 = vsel %vm443_vm1, %v508_v18, 0.0 }
  0xde   : > { %v516_v40 = vsel %vm443_vm1, %v499_v34, 0.0  ;;  %449 = vst.msk [vmem:[%s943_s5 + $0x28] sm:$0xff] %vm443_vm1, %v752_v37  ;;  %v764_v44 = vpop.f32.mrf.mxu1  ;;  %v502_v46 = vmul.f32 %v752_v37, %v752_v37  ;;  %v469_v53 = vsel %vm443_vm1, %v752_v37, 0.0 }
  0xdf   : > { %v517_v41 = vadd.f32 %v516_v40, %v515_v35  ;;  %v384_v42 = vpop.f32.mrf.mxu0  ;;  %v466_v43 = vadd.f32 %v465_v39, %v464_v36  ;;  %457 = vst.msk [vmem:[%s943_s5 + $0x68] sm:$0xff] %vm443_vm1, %v764_v44  ;;  %v532_v24 = vsel %vm443_vm1, %v507_v14, 0.0  ;;  %v510_v28 = vmul.f32 %v764_v44, %v764_v44 }
  0xe0   : > { %448 = vst.msk [vmem:[%s943_s5 + $0x20] sm:$0xff] %vm443_vm1, %v384_v42  ;;  %v467_v47 = vsel %vm443_vm1, %v384_v42, 0.0  ;;  %v501_v48 = vmul.f32 %v384_v42, %v384_v42  ;;  %v424_v52 = vpop.f32.mrf.mxu1  ;;  %v522_v59 = vsel %vm443_vm1, %v502_v46, 0.0  ;;  %v485_v33 = vsel %vm443_vm1, %v764_v44, 0.0 }
  0xe1   : > { %v468_v49 = vadd.f32 %v467_v47, %v466_v43  ;;  %v519_v50 = vadd.f32 %v518_v45, %v517_v41  ;;  %v755_v51 = vpop.f32.mrf.mxu0  ;;  %456 = vst.msk [vmem:[%s943_s5 + $0x60] sm:$0xff] %vm443_vm1, %v424_v52  ;;  %v509_v20 = vmul.f32 %v424_v52, %v424_v52  ;;  %v483_v29 = vsel %vm443_vm1, %v424_v52, 0.0 }
  0xe2   : > { %v520_v54 = vsel %vm443_vm1, %v501_v48, 0.0  ;;  %451 = vst.msk [vmem:[%s943_s5 + $0x38] sm:$0xff] %vm443_vm1, %v755_v51  ;;  %v767_v58 = vpop.f32.mrf.mxu1  ;;  %v504_v60 = vmul.f32 %v755_v51, %v755_v51  ;;  %v473_v2 = vsel %vm443_vm1, %v755_v51, 0.0  ;;  %v538_v37 = vsel %vm443_vm1, %v510_v28, 0.0 }
  0xe3   : > { %v521_v55 = vadd.f32 %v520_v54, %v519_v50  ;;  %v394_v56 = vpop.f32.mrf.mxu0  ;;  %v470_v57 = vadd.f32 %v469_v53, %v468_v49  ;;  %459 = vst.msk [vmem:[%s943_s5 + $0x78] sm:$0xff] %vm443_vm1, %v767_v58  ;;  %v536_v34 = vsel %vm443_vm1, %v509_v20, 0.0  ;;  %v512_v38 = vmul.f32 %v767_v58, %v767_v58 }
  0xe4   : > { %450 = vst.msk [vmem:[%s943_s5 + $0x30] sm:$0xff] %vm443_vm1, %v394_v56  ;;  %v471_v61 = vsel %vm443_vm1, %v394_v56, 0.0  ;;  %v503_v62 = vmul.f32 %v394_v56, %v394_v56  ;;  %v434_v1 = vpop.f32.mrf.mxu1  ;;  %v526_v7 = vsel %vm443_vm1, %v504_v60, 0.0  ;;  %v489_v42 = vsel %vm443_vm1, %v767_v58, 0.0 }
  0xe5   : > { %v472_v63 = vadd.f32 %v471_v61, %v470_v57  ;;  %v523_v0 = vadd.f32 %v522_v59, %v521_v55  ;;  %458 = vst.msk [vmem:[%s943_s5 + $0x70] sm:$0xff] %vm443_vm1, %v434_v1  ;;  %v511_v35 = vmul.f32 %v434_v1, %v434_v1  ;;  %v487_v39 = vsel %vm443_vm1, %v434_v1, 0.0 }
  0xe6   : > { %v524_v3 = vsel %vm443_vm1, %v503_v62, 0.0  ;;  %v542_v46 = vsel %vm443_vm1, %v512_v38, 0.0 }
  0xe7   : > { %v474_v5 = vadd.f32 %v473_v2, %v472_v63  ;;  %v525_v6 = vadd.f32 %v524_v3, %v523_v0  ;;  %v540_v43 = vsel %vm443_vm1, %v511_v35, 0.0 }
  0xe9   : > { %v527_v10 = vadd.f32 %v526_v7, %v525_v6  ;;  %v476_v11 = vadd.f32 %v475_v9, %v474_v5 }
  0xeb   : > { %v529_v15 = vadd.f32 %v528_v13, %v527_v10  ;;  %v478_v16 = vadd.f32 %v477_v12, %v476_v11 }
  0xed   : > { %v480_v21 = vadd.f32 %v479_v19, %v478_v16  ;;  %v531_v22 = vadd.f32 %v530_v17, %v529_v15 }
  0xef   : > { %v533_v25 = vadd.f32 %v532_v24, %v531_v22  ;;  %v482_v26 = vadd.f32 %v481_v23, %v480_v21 }
  0xf1   : > { %v484_v31 = vadd.f32 %v483_v29, %v482_v26  ;;  %v535_v32 = vadd.f32 %v534_v27, %v533_v25 }
  0xf3   : > { %v537_v30 = vadd.f32 %v536_v34, %v535_v32  ;;  %v486_v36 = vadd.f32 %v485_v33, %v484_v31 }
  0xf5   : > { %v488_v40 = vadd.f32 %v487_v39, %v486_v36  ;;  %v539_v41 = vadd.f32 %v538_v37, %v537_v30 }
  0xf7   : > { %v490_v44 = vadd.f32 %v489_v42, %v488_v40  ;;  %v541_v45 = vadd.f32 %v540_v43, %v539_v41 }
  0xf9   : > { %v491_v47 = vrot.slane %v490_v44, 4  ;;  %v543_v48 = vadd.f32 %v542_v46, %v541_v45 }
  0xfb   : > { %v492_v49 = vadd.f32 %v491_v47, %v490_v44  ;;  %v544_v50 = vrot.slane %v543_v48, 4 }
  0xfd   : > { %v493_v51 = vrot.slane %v492_v49, 2  ;;  %v545_v52 = vadd.f32 %v544_v50, %v543_v48 }
  0xff   : > { %v494_v53 = vadd.f32 %v493_v51, %v492_v49  ;;  %v546_v54 = vrot.slane %v545_v52, 2 }
 0x101   : > { %v495_v55 = vrot.slane %v494_v53, 1  ;;  %v547_v56 = vadd.f32 %v546_v54, %v545_v52 }
 0x103   : > { %v548_v57 = vrot.slane %v547_v56, 1  ;;  %v496_v58 = vadd.f32 %v495_v55, %v494_v53 }
 0x105   : > { %v549_v59 = vadd.f32 %v548_v57, %v547_v56 }
 0x107   : > { %v551_v60 = vsel %vm550_vm2, %v496_v58, %v549_v59 }
 0x108   : > { %553 = vst.msk [vmem:[%s230_s11] sm:$0x3] %vm552_vm3, %v551_v60 }
 0x109 PF: > { %s14_s16 = sadd.s32 1, %s850_s16   ;;  %s1046_s12 = smov %s842_s14 }
 0x10a   : > { %p11_p8 = scmp.ge.s32.totalorder %s14_s16, 6   ;;  %s1047_s13 = smov %s846_s15 }
 0x10b   : > { %s1048_s14 = smov %s1051_s17  ;;  %s1049_s15 = smov %s1055_s18 }
 0x10c   :  { %13 = sbr.rel (!%p11_p8) target bundleno = 3 (0x3), region = 70 }

// kernel: upsampling_block_forward.3
= control target key start
LH: loop header
LB: loop body
LE: loop exit
PB: predicated region body
PF: predicated region fallthrough
CT: control target
= control target key end

     0   :  { %s501_s9 = smov 0   ;;  %s503_s10 = smov 0   ;;  %s614_s0 = inlined_call_operand.vmem [shape: f32[2,256,32], index: 0, kind: input, shape index: {}, may-alias: {0,2}]   ;;  %s615_s1 = inlined_call_operand.vmem [shape: f32[2,2,32], index: 1, kind: input, shape index: {}]   ;;  %s616_s2 = inlined_call_operand.vmem [shape: f32[2,256,32], index: 2, kind: output, shape index: {}, may-alias: {0,2}]  }
   0x1   :  { %s505_s11 = smov 0   ;;  %s507_s12 = smov 0  }
   0x2   :  { %s509_s13 = smov 0  }
   0x3 LB: > { %s21_s14 = sadd.s32 1, %s476_s11  ;;  %s24_s15 = sadd.s32 1, %s480_s12  ;;  %s484_s13 = sphi %s509_s13, %s12_s13   ;;  %s480_s12 = sphi %s507_s12, %s620_s12   ;;  %s476_s11 = sphi %s505_s11, %s619_s11   ;;  %s472_s10 = sphi %s503_s10, %s618_s10   ;;  %s468_s9 = sphi %s501_s9, %s617_s9  }
   0x4   : > { %p22_p0 = scmp.ge.s32.totalorder %s21_s14, 2  ;;  %p396_p1 = scmp.ge.s32.totalorder %s484_s13, 1 }
   0x5   : > { %p142_p2 = scmp.lt.s32.totalorder %s484_s13, 5 }
   0x6   : > { %s622_s14 = smov (%p22_p0, %s21_s14), 0  ;;  %s624_s15 = smov (!%p22_p0, %s24_s15), %s480_s12 }
   0x7   : > { %p143_p3 = pnand %p396_p1, %p142_p2  ;;  %p26_p4 = scmp.ge.s32.totalorder %s624_s15, 2 }
   0x8   : > { %s397_s16 = sshll.u32 (!%p143_p3), %s468_s9, 4  ;;  %p177_p5 = scmp.lt.s32.totalorder (!%p143_p3), %s472_s10, 1 }
   0x9   : > { %s626_s15 = smov (%p26_p4, %s624_s15), 0  ;;  %146 = sbr.rel (%p143_p3) target bundleno = 40 (0x28), region = 28 }
   0xa   : > { %p179_p6 = scmp.lt.s32.totalorder (!%p143_p3), %s397_s16, 31 }
   0xe   : > { %v217_v0 = vlaneseq  ;;  %s628_s10 = smov (!%p177_p5, %s472_s10), 1  ;;  %s630_s16 = smov (!%p179_p6, %s397_s16), 31  ;;  %vm273_vm0 = vcmask 261120  }
   0xf   : > { %s398_s17 = sshll.u32 %s628_s10, 5  ;;  %s400_s18 = sshll.u32 %s628_s10, 1 }
  0x10   : > { %v218_v1 = vshrl.u32 %v217_v0, 7  ;;  %s531_s19 = sadd.s32 %s398_s17, %s630_s16  ;;  %s189_s22 = scalar_lea.vmem %s615_s1, %s400_s18 }
  0x11   : > { %s399_s23 = sshll.u32 %s531_s19, 3  ;;  %v216_v4 = vld [vmem:[%s189_s22] sm:$0x3] }
  0x12   : > { %v219_v2 = vsub.s32 0, %v218_v1  ;;  %v239_v3 = vsub.s32 1, %v218_v1  ;;  %s542_s26 = scalar_lea.vmem %s614_s0, %s399_s23  ;;  %s565_s29 = scalar_lea.vmem %s616_s2, %s399_s23 }
  0x13   : > { %v200_v7 = vld [vmem:[%s542_s26] sm:$0xff]  ;;  %v201_v8 = vld [vmem:[%s542_s26 + $0x8] sm:$0xff]  ;;  %v202_v9 = vld [vmem:[%s542_s26 + $0x10] sm:$0xff] }
  0x14   : > { %v220_v5 = vrot.slane %v216_v4, %v219_v2  ;;  %v240_v6 = vrot.slane %v216_v4, %v239_v3  ;;  %v203_v10 = vld [vmem:[%s542_s26 + $0x18] sm:$0xff]  ;;  %v204_v11 = vld [vmem:[%s542_s26 + $0x20] sm:$0xff]  ;;  %v205_v12 = vld [vmem:[%s542_s26 + $0x28] sm:$0xff] }
  0x15   : > { %v206_v16 = vld [vmem:[%s542_s26 + $0x30] sm:$0xff]  ;;  %v207_v17 = vld [vmem:[%s542_s26 + $0x38] sm:$0xff]  ;;  %v208_v18 = vld [vmem:[%s542_s26 + $0x40] sm:$0xff] }
  0x16   : > { %v221_v13 = vsub.f32 %v200_v7, %v220_v5  ;;  %v222_v14 = vsub.f32 %v201_v8, %v220_v5  ;;  %v223_v15 = vsub.f32 %v202_v9, %v220_v5  ;;  %v224_v19 = vsub.f32 %v203_v10, %v220_v5  ;;  %v209_v22 = vld [vmem:[%s542_s26 + $0x48] sm:$0xff]  ;;  %v210_v23 = vld [vmem:[%s542_s26 + $0x50] sm:$0xff]  ;;  %v211_v24 = vld [vmem:[%s542_s26 + $0x58] sm:$0xff] }
  0x17   : > { %v225_v20 = vsub.f32 %v204_v11, %v220_v5  ;;  %v226_v21 = vsub.f32 %v205_v12, %v220_v5  ;;  %v227_v25 = vsub.f32 %v206_v16, %v220_v5  ;;  %v228_v26 = vsub.f32 %v207_v17, %v220_v5  ;;  %v212_v29 = vld [vmem:[%s542_s26 + $0x60] sm:$0xff]  ;;  %v213_v30 = vld [vmem:[%s542_s26 + $0x68] sm:$0xff]  ;;  %v214_v31 = vld [vmem:[%s542_s26 + $0x70] sm:$0xff] }
  0x18   : > { %v229_v27 = vsub.f32 %v208_v18, %v220_v5  ;;  %v241_v28 = vmul.f32 %v240_v6, %v221_v13  ;;  %v230_v32 = vsub.f32 %v209_v22, %v220_v5  ;;  %v231_v33 = vsub.f32 %v210_v23, %v220_v5  ;;  %v215_v36 = vld [vmem:[%s542_s26 + $0x78] sm:$0xff] }
  0x19   : > { %v232_v34 = vsub.f32 %v211_v24, %v220_v5  ;;  %v242_v35 = vmul.f32 %v240_v6, %v222_v14  ;;  %v233_v37 = vsub.f32 %v212_v29, %v220_v5  ;;  %v234_v38 = vsub.f32 %v213_v30, %v220_v5 }
  0x1a   : > { %v235_v39 = vsub.f32 %v214_v31, %v220_v5  ;;  %v243_v40 = vmul.f32 %v240_v6, %v223_v15  ;;  %v236_v41 = vsub.f32 %v215_v36, %v220_v5  ;;  %v244_v42 = vmul.f32 %v240_v6, %v224_v19 }
  0x1b   : > { %v245_v43 = vmul.f32 %v240_v6, %v225_v20  ;;  %v246_v44 = vmul.f32 %v240_v6, %v226_v21  ;;  %v247_v45 = vmul.f32 %v240_v6, %v227_v25  ;;  %v248_v46 = vmul.f32 %v240_v6, %v228_v26 }
  0x1c   : > { %v249_v47 = vmul.f32 %v240_v6, %v229_v27  ;;  %v250_v48 = vmul.f32 %v240_v6, %v230_v32  ;;  %v251_v49 = vmul.f32 %v240_v6, %v231_v33  ;;  %v252_v50 = vmul.f32 %v240_v6, %v232_v34 }
  0x1d   : > { %v253_v51 = vmul.f32 %v240_v6, %v233_v37  ;;  %v254_v52 = vmul.f32 %v240_v6, %v234_v38  ;;  %v255_v53 = vmul.f32 %v240_v6, %v235_v39  ;;  %v256_v54 = vmul.f32 %v240_v6, %v236_v41 }
  0x1e   : > { %v257_v55 = vmax.f32 %v241_v28, 0.0  ;;  %v258_v56 = vmax.f32 %v242_v35, 0.0  ;;  %v259_v57 = vmax.f32 %v243_v40, 0.0  ;;  %v260_v58 = vmax.f32 %v244_v42, 0.0 }
  0x1f   : > { %v261_v59 = vmax.f32 %v245_v43, 0.0  ;;  %v262_v60 = vmax.f32 %v246_v44, 0.0  ;;  %v263_v61 = vmax.f32 %v247_v45, 0.0  ;;  %v264_v62 = vmax.f32 %v248_v46, 0.0 }
  0x20   : > { %v265_v63 = vmax.f32 %v249_v47, 0.0  ;;  %v266_v0 = vmax.f32 %v250_v48, 0.0  ;;  %274 = vst.msk [vmem:[%s565_s29] sm:$0xff] %vm273_vm0, %v257_v55  ;;  %275 = vst.msk [vmem:[%s565_s29 + $0x8] sm:$0xff] %vm273_vm0, %v258_v56  ;;  %v267_v1 = vmax.f32 %v251_v49, 0.0  ;;  %v268_v2 = vmax.f32 %v252_v50, 0.0 }
  0x21   : > { %v269_v3 = vmax.f32 %v253_v51, 0.0  ;;  %v270_v4 = vmax.f32 %v254_v52, 0.0  ;;  %276 = vst.msk [vmem:[%s565_s29 + $0x10] sm:$0xff] %vm273_vm0, %v259_v57  ;;  %277 = vst.msk [vmem:[%s565_s29 + $0x18] sm:$0xff] %vm273_vm0, %v260_v58  ;;  %v271_v5 = vmax.f32 %v255_v53, 0.0  ;;  %v272_v6 = vmax.f32 %v256_v54, 0.0 }
  0x22   : > { %278 = vst.msk [vmem:[%s565_s29 + $0x20] sm:$0xff] %vm273_vm0, %v261_v59  ;;  %279 = vst.msk [vmem:[%s565_s29 + $0x28] sm:$0xff] %vm273_vm0, %v262_v60 }
  0x23   : > { %280 = vst.msk [vmem:[%s565_s29 + $0x30] sm:$0xff] %vm273_vm0, %v263_v61  ;;  %281 = vst.msk [vmem:[%s565_s29 + $0x38] sm:$0xff] %vm273_vm0, %v264_v62 }
  0x24   : > { %282 = vst.msk [vmem:[%s565_s29 + $0x40] sm:$0xff] %vm273_vm0, %v265_v63  ;;  %283 = vst.msk [vmem:[%s565_s29 + $0x48] sm:$0xff] %vm273_vm0, %v266_v0 }
  0x25   : > { %284 = vst.msk [vmem:[%s565_s29 + $0x50] sm:$0xff] %vm273_vm0, %v267_v1  ;;  %285 = vst.msk [vmem:[%s565_s29 + $0x58] sm:$0xff] %vm273_vm0, %v268_v2 }
  0x26   : > { %286 = vst.msk [vmem:[%s565_s29 + $0x60] sm:$0xff] %vm273_vm0, %v269_v3  ;;  %287 = vst.msk [vmem:[%s565_s29 + $0x68] sm:$0xff] %vm273_vm0, %v270_v4 }
  0x27   : > { %288 = vst.msk [vmem:[%s565_s29 + $0x70] sm:$0xff] %vm273_vm0, %v271_v5  ;;  %289 = vst.msk [vmem:[%s565_s29 + $0x78] sm:$0xff] %vm273_vm0, %v272_v6 }
  0x28 PF: > { %s12_s13 = sadd.s32 1, %s484_s13   ;;  %s617_s9 = smov %s476_s11 }
  0x29   : > { %p9_p7 = scmp.ge.s32.totalorder %s12_s13, 6   ;;  %s618_s10 = smov %s480_s12 }
  0x2a   : > { %s619_s11 = smov %s622_s14  ;;  %s620_s12 = smov %s626_s15 }
  0x2b   :  { %11 = sbr.rel (!%p9_p7) target bundleno = 3 (0x3), region = 61 }

</bundles_post_ra>
